<compile_context>
chip_gen: v7x
topology: tpu7x:2x2x1
jax: 0.10.0
libtpu: 0.0.40
codegen_flags: <defaults>
</compile_context>

<pallas_src>
import jax
import jax.numpy as jnp
from jax.experimental import pallas as pl
from jax.experimental.pallas import tpu as pltpu


def _round_up(x, m):
    return ((x + m - 1) // m) * m


def _vmem_capacity_bytes():
    try:
        cap = getattr(pltpu.get_tpu_info(), "vmem_capacity_bytes", None)
        if cap:
            return int(cap)
    except Exception:
        pass
    return 64 * 1024 * 1024          # conservative (v7x-sized) fallback


def _num_tensorcores():
    try:
        dev = jax.devices()[0]
        n = getattr(dev, "num_cores", None)
        if n:
            return max(1, int(n))
        if "v7" in str(getattr(dev, "device_kind", "")).lower():
            return 2
    except Exception:
        pass
    return 1


def _caa_kernel(hs_ref, ctx_ref, w1_ref, w2_ref, wp_ref, bp_ref, out_ref, acc_ref):
    # hs_ref : (BB, Lt, H)    bf16 block of hidden_states
    # ctx_ref: (1, BB, O_pad) f32, fc_3(h_forward) for this batch block (hoisted)
    # w1_ref : (H, O_pad)     bf16 fc_1 weight (in, out), zero-padded on O
    # w2_ref : (O_pad, 128)   bf16 fc_2 weight, zero-padded on O
    # wp_ref : (1, H)         f32 linear_projection weight as a row
    # bp_ref : (1, 1) SMEM    f32 linear_projection bias scalar
    # out_ref: (1, BB, 128)   f32 lane-dense output rows
    # acc_ref: (BB, 128)      f32 accumulator over L-tiles
    lt = pl.program_id(1)

    @pl.when(lt == 0)
    def _():
        acc_ref[...] = jnp.zeros_like(acc_ref)

    BB, Lt, H = hs_ref.shape
    n_slots = w2_ref.shape[1]

    h2 = hs_ref[...].reshape(BB * Lt, H)                            # bf16, layout no-op (Lt % 8 == 0)

    # fc_1 over all (batch, position) rows at once: bf16 x bf16 -> f32 accumulate.
    proj = jnp.dot(h2, w1_ref[...], preferred_element_type=jnp.float32)        # (BB*Lt, O_pad) f32
    t = jnp.tanh(proj.reshape(BB, Lt, -1) + ctx_ref[0][:, None, :])            # (BB, Lt, O_pad) f32

    # fc_2 -> attention scores over the 128 slots.
    s = jnp.dot(t.astype(w2_ref.dtype).reshape(BB * Lt, -1), w2_ref[...],
                preferred_element_type=jnp.float32)                            # (BB*Lt, 128) f32

    # Numerically stable softmax numerator; the denominator is folded into the
    # per-row scalar below so the full (BB*Lt, 128) `a` is never materialized.
    e = jnp.exp(s - jnp.max(s, axis=-1, keepdims=True))                        # (BB*Lt, 128)
    denom = jnp.sum(e, axis=-1, keepdims=True)                                 # (BB*Lt, 1)

    # Tail reassociation: v = H @ wp per row, w = v / denom, x += sum_l e * w.
    v = jnp.sum(h2 * wp_ref[...], axis=-1, keepdims=True)                      # (BB*Lt, 1) f32
    w = v * pl.reciprocal(denom, approx=True)                                  # (BB*Lt, 1)
    acc_ref[...] += jnp.sum((e * w).reshape(BB, Lt, n_slots), axis=1)          # (BB, 128)

    @pl.when(lt == pl.num_programs(1) - 1)
    def _():
        out_ref[...] = (acc_ref[...] + bp_ref[0, 0]).reshape(1, BB, n_slots)


def _context_aware_attention_impl(hidden_states, h_forward, params):
    B, L, H = hidden_states.shape
    w1 = params["w1"]   # (H, O)
    w3 = params["w3"]   # (H//2, O)
    b3 = params["b3"]   # (1, O)
    w2 = params["w2"]   # (O, 128)
    wp = params["wp"]   # (H, 1)
    bp = params["bp"]   # (1, 1)
    O = w1.shape[1]
    n_slots = w2.shape[1]

    # Context path hoisted: tiny (B, H/2) @ (H/2, O) matvec, one XLA dot.
    ctx = jnp.dot(h_forward, w3, precision=jax.lax.Precision.HIGHEST) + b3      # (B, O) f32

    # Zero-pad the fc_1 -> fc_2 width to a lane multiple (exact: tanh(0)=0 and
    # the corresponding w2 rows are zero).
    O_pad = _round_up(O, 128)
    if O_pad != O:
        w1 = jnp.pad(w1, ((0, 0), (0, O_pad - O)))
        w2 = jnp.pad(w2, ((0, O_pad - O), (0, 0)))
        ctx = jnp.pad(ctx, ((0, 0), (0, O_pad - O)))

    # Pad L to a multiple of 8 sublanes so the in-kernel reshapes stay layout
    # no-ops.  Exact: padded rows have v = h.wp = 0 and contribute nothing.
    L8 = _round_up(max(L, 8), 8)
    if L8 != L:
        hidden_states = jnp.pad(hidden_states, ((0, 0), (0, L8 - L), (0, 0)))

    # ---- generation-aware VMEM sizing -------------------------------------
    vmem_cap = _vmem_capacity_bytes()
    vmem_limit = min(int(vmem_cap * 0.7), 96 * 1024 * 1024)
    budget = int(vmem_limit * 0.75)          # headroom for compiler scratch

    def per_elem_bytes(lt):
        # Conservative live bytes per batch element within one grid step.
        hs_b = 3 * lt * H * 2                      # input block (x2 dbuf) + reshape copy (bf16)
        proj_b = lt * O_pad * (4 + 4 + 2)          # proj f32 + tanh tmp f32 + t bf16
        score_b = 3 * lt * n_slots * 4             # s, e, one temp (f32)
        misc_b = lt * 4 * 4                        # v / w / max / denom columns
        io_b = 2 * O_pad * 4 + 3 * n_slots * 4     # ctx dbuf + out dbuf + acc
        return hs_b + proj_b + score_b + misc_b + io_b

    fixed = 2 * (H * O_pad + O_pad * n_slots) * 2 + 2 * H * 4 + (1 << 20)

    # L tile: prefer the whole (padded) sequence; shrink only if it would not
    # leave room for a reasonable batch block.  Candidates are multiple-of-8
    # divisors of L8 (8 and L8 always qualify).
    lt_cands = sorted({d for d in range(8, L8 + 1, 8) if L8 % d == 0}, reverse=True)
    Lt = lt_cands[-1]
    want_bb = min(B, 8)
    for cand in lt_cands:
        if fixed + want_bb * per_elem_bytes(cand) <= budget:
            Lt = cand
            break
    LT = L8 // Lt

    # Batch block: largest divisor of B that fits the budget (prefer multiples
    # of 8); cap so multi-TensorCore chips (v7x) get >= num_cores grid steps.
    max_bb = max(1, (budget - fixed) // per_elem_bytes(Lt))
    n_cores = _num_tensorcores()
    if n_cores > 1 and B > 1:
        max_bb = min(max_bb, -(-B // n_cores))
    max_bb = max(1, min(max_bb, B))
    divs = [d for d in range(1, max_bb + 1) if B % d == 0]
    divs8 = [d for d in divs if d % 8 == 0]
    if divs8 and 2 * max(divs8) >= max(divs):
        batch_block = max(divs8)
    else:
        batch_block = max(divs)
    if batch_block * 4 < min(max_bb, B):       # no useful divisor -> padded fallback
        batch_block = (min(max_bb, B) // 8) * 8 or min(max_bb, B)

    G = pl.cdiv(B, batch_block)
    B_pad = G * batch_block
    if B_pad != B:
        hidden_states = jnp.pad(hidden_states, ((0, B_pad - B), (0, 0), (0, 0)))
        ctx = jnp.pad(ctx, ((0, B_pad - B), (0, 0)))

    # bf16 MXU operands; accumulation stays f32 inside the kernel.
    hs_bf16 = hidden_states.astype(jnp.bfloat16)
    w1_bf16 = w1.astype(jnp.bfloat16)
    w2_bf16 = w2.astype(jnp.bfloat16)

    ctx3 = ctx.reshape(G, batch_block, O_pad)
    wp_row = wp.reshape(1, H).astype(jnp.float32)
    bp_s = bp.reshape(1, 1).astype(jnp.float32)

    grid_spec = pltpu.PrefetchScalarGridSpec(
        num_scalar_prefetch=0,
        grid=(G, LT),
        in_specs=[
            pl.BlockSpec((batch_block, Lt, H), lambda g, l: (g, l, 0)),      # hidden_states
            pl.BlockSpec((1, batch_block, O_pad), lambda g, l: (g, 0, 0)),   # ctx (resident over L)
            pl.BlockSpec((H, O_pad), lambda g, l: (0, 0)),                   # W1 (resident)
            pl.BlockSpec((O_pad, n_slots), lambda g, l: (0, 0)),             # W2 (resident)
            pl.BlockSpec((1, H), lambda g, l: (0, 0)),                       # wp row
            pl.BlockSpec(memory_space=pltpu.MemorySpace.SMEM),               # bp scalar
        ],
        out_specs=pl.BlockSpec((1, batch_block, n_slots), lambda g, l: (g, 0, 0)),
        scratch_shapes=[pltpu.VMEM((batch_block, n_slots), jnp.float32)],
    )

    out3 = pl.pallas_call(
        _caa_kernel,
        out_shape=jax.ShapeDtypeStruct((G, batch_block, n_slots), jnp.float32),
        grid_spec=grid_spec,
        compiler_params=pltpu.CompilerParams(
            dimension_semantics=("parallel", "arbitrary"),
            vmem_limit_bytes=vmem_limit),
    )(hs_bf16, ctx3, w1_bf16, w2_bf16, wp_row, bp_s)

    # Lane-dense (G, BB, 128) -> torch layout (B, 128, 1) via a free reshape.
    return out3.reshape(B_pad, n_slots)[:B, :, None]


context_aware_attention = jax.jit(_context_aware_attention_impl)


def _reference(hidden_states, h_forward, params):
    # Pure-JAX reference mirroring the PyTorch forward (high-precision dots).
    hp = jax.lax.Precision.HIGHEST
    ctx = jnp.dot(h_forward, params["w3"], precision=hp) + params["b3"]        # (B, O)
    t = jnp.tanh(jnp.einsum("blh,ho->blo", hidden_states, params["w1"],
                            precision=hp) + ctx[:, None, :])                   # (B, L, O)
    s = jnp.einsum("blo,ok->blk", t, params["w2"], precision=hp)               # (B, L, 128)
    a = jax.nn.softmax(s, axis=-1)
    m = jnp.einsum("blk,blh->bkh", a, hidden_states, precision=hp)             # (B, 128, H)
    return jnp.einsum("bkh,hj->bkj", m, params["wp"], precision=hp) + params["bp"]


if __name__ == "__main__":
    # Small shapes consistent with the module's forward.
    B, L, H, O = 2, 16, 64, 32       # batch, seq_len, hidden_size, output_size
    N_SLOTS = 128                    # fc_2 out_features (literal 128 in the module)

    key = jax.random.PRNGKey(0)
    k_hs, k_hf, k1, k3, kb3, k2, kp, kbp = jax.random.split(key, 8)

    hidden_states = jax.random.normal(k_hs, (B, L, H), dtype=jnp.float32)
    h_forward = jax.random.normal(k_hf, (B, H // 2), dtype=jnp.float32)

    params = {
        "w1": jax.random.normal(k1, (H, O), dtype=jnp.float32) * 0.05,
        "w3": jax.random.normal(k3, (H // 2, O), dtype=jnp.float32) * 0.05,
        "b3": jax.random.normal(kb3, (1, O), dtype=jnp.float32) * 0.05,
        "w2": jax.random.normal(k2, (O, N_SLOTS), dtype=jnp.float32) * 0.05,
        "wp": jax.random.normal(kp, (H, 1), dtype=jnp.float32) * 0.05,
        "bp": jax.random.normal(kbp, (1, 1), dtype=jnp.float32) * 0.05,
    }

    out = context_aware_attention(hidden_states, h_forward, params)
    out = jax.block_until_ready(out)

    ref = _reference(hidden_states, h_forward, params)
    assert out.shape == (B, N_SLOTS, 1), out.shape
    max_err = float(jnp.max(jnp.abs(out - ref)))
    # bf16 MXU inputs + approx reciprocal -> looser tolerance than the f32 run.
    assert jnp.allclose(out, ref, atol=2e-2, rtol=2e-2), max_err

    print("KERNEL_OK")
</pallas_src>

<mosaic_0001>
module attributes {stable_mosaic.version = 11 : i64} {
  func.func @_caa_kernel(%arg0: i32, %arg1: i32, %arg2: memref<2x16x64xbf16, #tpu.memory_space<vmem>>, %arg3: memref<1x2x128xf32, #tpu.memory_space<vmem>>, %arg4: memref<64x128xbf16, #tpu.memory_space<vmem>>, %arg5: memref<128x128xbf16, #tpu.memory_space<vmem>>, %arg6: memref<1x64xf32, #tpu.memory_space<vmem>>, %arg7: memref<1x1xf32, #tpu.memory_space<smem>>, %arg8: memref<1x2x128xf32, #tpu.memory_space<vmem>>, %arg9: memref<2x128xf32, #tpu.memory_space<vmem>>) attributes {dimension_semantics = [#tpu.dimension_semantics<parallel>, #tpu.dimension_semantics<arbitrary>], iteration_bounds = array<i64: 1, 1>, scalar_prefetch = 0 : i64, scratch_operands = 1 : i64, tpu.core_type = #tpu.core_type<tc>, window_params = [{transform_indices = @transform_0, window_bounds = array<i64: 2, 16, 64>}, {transform_indices = @transform_1, window_bounds = array<i64: 1, 2, 128>}, {pipeline_mode = #tpu.pipeline_mode<synchronous>, transform_indices = @transform_2, window_bounds = array<i64: 64, 128>}, {pipeline_mode = #tpu.pipeline_mode<synchronous>, transform_indices = @transform_3, window_bounds = array<i64: 128, 128>}, {pipeline_mode = #tpu.pipeline_mode<synchronous>, transform_indices = @transform_4, window_bounds = array<i64: 1, 64>}, {transform_indices = @transform_5, window_bounds = array<i64: 1, 1>}, {transform_indices = @transform_6, window_bounds = array<i64: 1, 2, 128>}]} {
    %c0_i32 = arith.constant 0 : i32
    %0 = arith.cmpi eq, %arg1, %c0_i32 : i32
    %1 = arith.extui %0 : i1 to i32
    %c0_i32_0 = arith.constant 0 : i32
    %2 = arith.cmpi ne, %1, %c0_i32_0 : i32
    scf.if %2 {
      %cst_23 = arith.constant 0.000000e+00 : f32
      %43 = vector.broadcast %cst_23 : f32 to vector<2x128xf32>
      %c0_24 = arith.constant 0 : index
      %c0_25 = arith.constant 0 : index
      %44 = vector.load %arg9[%c0_24, %c0_25] : memref<2x128xf32, #tpu.memory_space<vmem>>, vector<2x128xf32>
      tpu.vector_store %arg9[%c0_24, %c0_25], %43 {strides = array<i32>} : memref<2x128xf32, #tpu.memory_space<vmem>>, vector<2x128xf32>,
    } else {
    }
    %c0 = arith.constant 0 : index
    %c0_1 = arith.constant 0 : index
    %c0_2 = arith.constant 0 : index
    %3 = vector.load %arg2[%c0, %c0_1, %c0_2] : memref<2x16x64xbf16, #tpu.memory_space<vmem>>, vector<2x16x64xbf16>
    %4 = vector.shape_cast %3 : vector<2x16x64xbf16> to vector<32x64xbf16>
    %c0_3 = arith.constant 0 : index
    %c0_4 = arith.constant 0 : index
    %5 = vector.load %arg4[%c0_3, %c0_4] : memref<64x128xbf16, #tpu.memory_space<vmem>>, vector<64x128xbf16>
    %cst = arith.constant dense<0.000000e+00> : vector<32x128xf32>
    %6 = tpu.matmul %4, %5, %cst {dimension_numbers = #tpu.dot_dimension_numbers<[1], [0], [0], [1], [0, 0, 1, 1], [], []>} : vector<32x64xbf16>, vector<64x128xbf16>, vector<32x128xf32> -> vector<32x128xf32>
    %7 = vector.shape_cast %6 : vector<32x128xf32> to vector<2x16x128xf32>
    %c0_5 = arith.constant 0 : index
    %c0_6 = arith.constant 0 : index
    %c0_7 = arith.constant 0 : index
    %8 = vector.load %arg3[%c0_5, %c0_6, %c0_7] : memref<1x2x128xf32, #tpu.memory_space<vmem>>, vector<1x2x128xf32>
    %9 = vector.shape_cast %8 : vector<1x2x128xf32> to vector<2x128xf32>
    %10 = vector.shape_cast %9 : vector<2x128xf32> to vector<2x1x128xf32>
    %11 = vector.broadcast %10 : vector<2x1x128xf32> to vector<2x16x128xf32>
    %12 = arith.addf %7, %11 : vector<2x16x128xf32>
    %13 = math.tanh %12 : vector<2x16x128xf32>
    %14 = arith.truncf %13 : vector<2x16x128xf32> to vector<2x16x128xbf16>
    %15 = vector.shape_cast %14 : vector<2x16x128xbf16> to vector<32x128xbf16>
    %c0_8 = arith.constant 0 : index
    %c0_9 = arith.constant 0 : index
    %16 = vector.load %arg5[%c0_8, %c0_9] : memref<128x128xbf16, #tpu.memory_space<vmem>>, vector<128x128xbf16>
    %cst_10 = arith.constant dense<0.000000e+00> : vector<32x128xf32>
    %17 = tpu.matmul %15, %16, %cst_10 {dimension_numbers = #tpu.dot_dimension_numbers<[1], [0], [0], [1], [0, 0, 1, 1], [], []>} : vector<32x128xbf16>, vector<128x128xbf16>, vector<32x128xf32> -> vector<32x128xf32>
    %cst_11 = arith.constant dense<0xFF800000> : vector<32xf32>
    %18 = vector.multi_reduction <maximumf>, %17, %cst_11 [1] : vector<32x128xf32> to vector<32xf32>
    %19 = vector.shape_cast %18 : vector<32xf32> to vector<32x1xf32>
    %20 = vector.broadcast %19 : vector<32x1xf32> to vector<32x128xf32>
    %21 = arith.subf %17, %20 : vector<32x128xf32>
    %22 = math.exp %21 : vector<32x128xf32>
    %cst_12 = arith.constant dense<0.000000e+00> : vector<32xf32>
    %23 = vector.multi_reduction <add>, %22, %cst_12 [1] : vector<32x128xf32> to vector<32xf32>
    %24 = vector.shape_cast %23 : vector<32xf32> to vector<32x1xf32>
    %c0_13 = arith.constant 0 : index
    %c0_14 = arith.constant 0 : index
    %25 = vector.load %arg6[%c0_13, %c0_14] : memref<1x64xf32, #tpu.memory_space<vmem>>, vector<1x64xf32>
    %26 = arith.extf %4 : vector<32x64xbf16> to vector<32x64xf32>
    %27 = vector.broadcast %25 : vector<1x64xf32> to vector<32x64xf32>
    %28 = arith.mulf %26, %27 : vector<32x64xf32>
    %cst_15 = arith.constant dense<0.000000e+00> : vector<32xf32>
    %29 = vector.multi_reduction <add>, %28, %cst_15 [1] : vector<32x64xf32> to vector<32xf32>
    %30 = vector.shape_cast %29 : vector<32xf32> to vector<32x1xf32>
    %31 = tpu.reciprocal %24 {approx = true} : vector<32x1xf32> -> vector<32x1xf32>
    %32 = arith.mulf %30, %31 : vector<32x1xf32>
    %c0_16 = arith.constant 0 : index
    %c0_17 = arith.constant 0 : index
    %33 = vector.load %arg9[%c0_16, %c0_17] : memref<2x128xf32, #tpu.memory_space<vmem>>, vector<2x128xf32>
    %34 = vector.broadcast %32 : vector<32x1xf32> to vector<32x128xf32>
    %35 = arith.mulf %22, %34 : vector<32x128xf32>
    %36 = vector.shape_cast %35 : vector<32x128xf32> to vector<2x16x128xf32>
    %cst_18 = arith.constant dense<0.000000e+00> : vector<2x128xf32>
    %37 = vector.multi_reduction <add>, %36, %cst_18 [1] : vector<2x16x128xf32> to vector<2x128xf32>
    %38 = arith.addf %33, %37 : vector<2x128xf32>
    %c0_19 = arith.constant 0 : index
    %c0_20 = arith.constant 0 : index
    %39 = vector.load %arg9[%c0_19, %c0_20] : memref<2x128xf32, #tpu.memory_space<vmem>>, vector<2x128xf32>
    tpu.vector_store %arg9[%c0_19, %c0_20], %38 {strides = array<i32>} : memref<2x128xf32, #tpu.memory_space<vmem>>, vector<2x128xf32>,
    %c0_i32_21 = arith.constant 0 : i32
    %40 = arith.cmpi eq, %arg1, %c0_i32_21 : i32
    %41 = arith.extui %40 : i1 to i32
    %c0_i32_22 = arith.constant 0 : i32
    %42 = arith.cmpi ne, %41, %c0_i32_22 : i32
    scf.if %42 {
      %c0_23 = arith.constant 0 : index
      %c0_24 = arith.constant 0 : index
      %43 = vector.load %arg9[%c0_23, %c0_24] : memref<2x128xf32, #tpu.memory_space<vmem>>, vector<2x128xf32>
      %c0_25 = arith.constant 0 : index
      %c0_26 = arith.constant 0 : index
      %44 = memref.load %arg7[%c0_25, %c0_26] : memref<1x1xf32, #tpu.memory_space<smem>>
      %45 = vector.broadcast %44 : f32 to vector<2x128xf32>
      %46 = arith.addf %43, %45 : vector<2x128xf32>
      %47 = vector.shape_cast %46 : vector<2x128xf32> to vector<1x2x128xf32>
      %c0_27 = arith.constant 0 : index
      %c0_28 = arith.constant 0 : index
      %c0_29 = arith.constant 0 : index
      %48 = vector.load %arg8[%c0_27, %c0_28, %c0_29] : memref<1x2x128xf32, #tpu.memory_space<vmem>>, vector<1x2x128xf32>
      tpu.vector_store %arg8[%c0_27, %c0_28, %c0_29], %47 {strides = array<i32>} : memref<1x2x128xf32, #tpu.memory_space<vmem>>, vector<1x2x128xf32>,
    } else {
    }
    return
  }
  func.func @transform_0(%arg0: i32, %arg1: i32) -> (i32, i32, i32) {
    %c0_i32 = arith.constant 0 : i32
    %c0_i32_0 = arith.constant 0 : i32
    return %arg0, %arg1, %c0_i32 : i32, i32, i32
  }
  func.func @transform_1(%arg0: i32, %arg1: i32) -> (i32, i32, i32) {
    %c0_i32 = arith.constant 0 : i32
    %c0_i32_0 = arith.constant 0 : i32
    %c0_i32_1 = arith.constant 0 : i32
    return %arg0, %c0_i32, %c0_i32_0 : i32, i32, i32
  }
  func.func @transform_2(%arg0: i32, %arg1: i32) -> (i32, i32) {
    %c0_i32 = arith.constant 0 : i32
    %c0_i32_0 = arith.constant 0 : i32
    %c0_i32_1 = arith.constant 0 : i32
    return %c0_i32, %c0_i32_0 : i32, i32
  }
  func.func @transform_3(%arg0: i32, %arg1: i32) -> (i32, i32) {
    %c0_i32 = arith.constant 0 : i32
    %c0_i32_0 = arith.constant 0 : i32
    %c0_i32_1 = arith.constant 0 : i32
    return %c0_i32, %c0_i32_0 : i32, i32
  }
  func.func @transform_4(%arg0: i32, %arg1: i32) -> (i32, i32) {
    %c0_i32 = arith.constant 0 : i32
    %c0_i32_0 = arith.constant 0 : i32
    %c0_i32_1 = arith.constant 0 : i32
    return %c0_i32, %c0_i32_0 : i32, i32
  }
  func.func @transform_5(%arg0: i32, %arg1: i32) -> (i32, i32) {
    %c0_i32 = arith.constant 0 : i32
    %c0_i32_0 = arith.constant 0 : i32
    %c0_i32_1 = arith.constant 0 : i32
    return %c0_i32, %c0_i32_0 : i32, i32
  }
  func.func @transform_6(%arg0: i32, %arg1: i32) -> (i32, i32, i32) {
    %c0_i32 = arith.constant 0 : i32
    %c0_i32_0 = arith.constant 0 : i32
    %c0_i32_1 = arith.constant 0 : i32
    return %arg0, %c0_i32, %c0_i32_0 : i32, i32, i32
  }
}

</mosaic_0001>

<bundles_post_ra>
// kernel: _context_aware_attention_impl.1
= control target key start
LH: loop header
LB: loop body
LE: loop exit
PB: predicated region body
PF: predicated region fallthrough
CT: control target
= control target key end

     0   :  { %vm77_vm0 = vcmask 523264   ;;  %s651_s0 = inlined_call_operand.vmem [shape: bf16[2,16,64], index: 0, kind: input, shape index: {}]   ;;  %s652_s1 = inlined_call_operand.vmem [shape: f32[1,2,128], index: 1, kind: input, shape index: {}]   ;;  %s653_s2 = inlined_call_operand.vmem [shape: bf16[64,128], index: 2, kind: input, shape index: {}]   ;;  %s654_s3 = inlined_call_operand.vmem [shape: bf16[128,128], index: 3, kind: input, shape index: {}]   ;;  %s655_s4 = inlined_call_operand.vmem [shape: f32[1,64], index: 4, kind: input, shape index: {}]   ;;  %s656_s5 = inlined_call_operand.<no memory space> [shape: f32[1,1], index: 5, kind: input, shape index: {}]   ;;  %s657_s6 = inlined_call_operand.hbm [shape: f32[1,2,128], index: 6, kind: output, shape index: {}]  }
   0x1   :  { %v470_v0 = vld [vmem:[%s653_s2] sm:$0xff]   ;;  %v471_v1 = vld [vmem:[%s653_s2 + $0x8] sm:$0xff]   ;;  %v472_v2 = vld [vmem:[%s653_s2 + $0x10] sm:$0xff]  }
   0x2   :  { %435 = vmatprep.subr.bf16.mxu0 %v470_v0  ;;  %v584_v3 = vld [vmem:[%s651_s0] sm:$0xff]   ;;  %v477_v5 = vld [vmem:[%s654_s3 + $0x8] sm:$0xff]   ;;  %v473_v6 = vld [vmem:[%s653_s2 + $0x18] sm:$0xff]  }
   0x3   :  { %436 = vmatpush3.bf16.msra.mxu0 %v470_v0  ;;  %v476_v4 = vld [vmem:[%s654_s3] sm:$0xff]   ;;  %443 = vmatprep.mubr.msk.bf16.mxu0 %vm77_vm0, %v584_v3  ;;  %v478_v7 = vld [vmem:[%s654_s3 + $0x10] sm:$0xff]   ;;  %v603_v8 = vld [vmem:[%s651_s0 + $0x8] sm:$0xff]  }
   0x4   :  { %437 = vmatprep.subr.bf16.mxu0 %v471_v1  ;;  %447 = vmatprep.subr.bf16.mxu1 %v476_v4 }
   0x5   :  { %448 = vmatpush3.bf16.msra.mxu1 %v476_v4 }
   0x6   :  { %449 = vmatprep.subr.bf16.mxu1 %v477_v5 }
   0x7   :  { %438 = vmatpush3.bf16.msra.mxu0 %v471_v1 }
   0x8   :  { %439 = vmatprep.subr.bf16.mxu0 %v472_v2 }
   0xb   :  { %440 = vmatpush3.bf16.msra.mxu0 %v472_v2 }
   0xc   :  { %12 = vsyncpa [#allocation5], 0  ;;  %441 = vmatprep.subr.bf16.mxu0 %v473_v6  ;;  %450 = vmatpush3.bf16.msra.mxu1 %v477_v5  ;;  %v479_v9 = vld [vmem:[%s654_s3 + $0x18] sm:$0xff]   ;;  %v480_v10 = vld [vmem:[%s654_s3 + $0x20] sm:$0xff]   ;;  %v534_v14 = vmov 1966171168   ;;  %v146_v16 = vlaneseq  ;;  %v319_v57 = vunpack.c.l.bf16 %v584_v3  ;;  %v320_v60 = vunpack.c.h.bf16 %v584_v3 }
   0xd   :  { %451 = vmatprep.subr.bf16.mxu1 %v478_v7  ;;  %v481_v11 = vld [vmem:[%s654_s3 + $0x28] sm:$0xff]   ;;  %v482_v12 = vld [vmem:[%s654_s3 + $0x30] sm:$0xff]   ;;  %v483_v13 = vld [vmem:[%s654_s3 + $0x38] sm:$0xff]   ;;  %v144_v15 = vunpack.c.l.s4 %v534_v14  ;;  %v321_v62 = vunpack.c.l.bf16 %v603_v8  ;;  %v322_v5 = vunpack.c.h.bf16 %v603_v8  ;;  %vm374_vm1 = vcmask 1041409   ;;  %s536_s26 = smov [#allocation4]  }
   0xe   :  { %v147_v18 = vshrl.u32 %v146_v16, 7  ;;  %v409_v19 = vld.sshfl [vmem:[%s652_s1] sm:$0x11 pattern:$0x75316420]  ;;  %s393_s27 = sshll.u32 %s536_s26, 4  ;;  %s394_s27 = int_to_ptr.vmem [resolvable:$true] %s393_s27 }
   0xf   :  { %442 = vmatpush3.bf16.msra.mxu0 %v473_v6  ;;  %v145_v17 = vunpack.c.0.s8 %v144_v15  ;;  %v142_v20 = vcombine.high %v409_v19, %v409_v19  ;;  %v418_v58 = vld [vmem:[%s655_s4] ss:$0 sm:$0xff]  ;;  %s510_s28 = scalar_lea.vmem %s394_s27, 32  ;;  %p515_p1 = scmp.lt.s32.totalorder %s394_s27, %s394_s27 }
  0x10   :  { %452 = vmatpush3.bf16.msra.mxu1 %v478_v7  ;;  %v159_v23 = vsub.s32 0, %v147_v18  ;;  %v329_v61 = vmul.f32 %v418_v58, %v319_v57  ;;  %v331_v2 = vmul.f32 %v418_v58, %v321_v62  ;;  %v330_v4 = vmul.f32 %v418_v58, %v320_v60  ;;  %p511_p0 = scmp.ne.s32.totalorder %s394_s27, %s510_s28  ;;  %p516_p2 = scmp.lt.s32.totalorder %s510_s28, %s510_s28 }
  0x11   :  { %453 = vmatprep.subr.bf16.mxu1 %v479_v9  ;;  %v148_v21 = vsub.s32 %v145_v17, %v147_v18 }
  0x12   :  { %444 = vmatmul.mubr.msk.bf16.vlgmr.msra.gmra.mrb[0].mxu0 %vm77_vm0, %v603_v8  ;;  %v333_v1 = vsel %vm77_vm0, %v329_v61, 0.0  ;;  %v339_v7 = vsel %vm77_vm0, %v331_v2, 0.0  ;;  %v336_v3 = vsel %vm77_vm0, %v330_v4, 0.0  ;;  %p517_p3 = por %p516_p2, %p515_p1 }
  0x13   :  { %v156_v22 = vrot.slane %v142_v20, %v148_v21  ;;  %v149_v24 = vrot.slane %v409_v19, %v148_v21 }
  0x14   :  { %454 = vmatpush3.bf16.msra.mxu1 %v479_v9  ;;  %v332_v9 = vmul.f32 %v418_v58, %v322_v5  ;;  %p518_p4 = pnand %p517_p3, %p511_p0 }
  0x15   :  { %455 = vmatprep.subr.bf16.mxu1 %v480_v10  ;;  %v164_v25 = vrot.slane %v156_v22, %v159_v23  ;;  %v160_v26 = vrot.slane %v149_v24, %v159_v23 }
  0x18   :  { %456 = vmatpush3.bf16.msra.mxu1 %v480_v10  ;;  %v342_v10 = vsel %vm77_vm0, %v332_v9, 0.0 }
  0x19   :  { %457 = vmatprep.subr.bf16.mxu1 %v481_v11 }
  0x1c   :  { %458 = vmatpush3.bf16.msra.mxu1 %v481_v11  ;;  %v535_v11 = vmov 0.0  }
  0x1d   :  { %459 = vmatprep.subr.bf16.mxu1 %v482_v12  ;;  %30 = vst [vmem:[#allocation2] sm:$0x3] %v535_v11 }
  0x20   :  { %460 = vmatpush3.bf16.msra.mxu1 %v482_v12 }
  0x21   :  { %461 = vmatprep.subr.bf16.mxu1 %v483_v13 }
  0x24   :  { %462 = vmatpush3.bf16.msra.mxu1 %v483_v13 }
  0xe5   :  { %v445_v27 = vpop.f32.mrb[0].mxu0 }
  0xe6   :  { %v169_v28 = vadd.f32 %v445_v27, %v164_v25  ;;  %v118_v29 = vpop.f32.mrb[1].mxu0 }
  0xe7   :  { %v167_v30 = vadd.f32 %v160_v26, %v118_v29  ;;  %v446_v31 = vpop.f32.mrb[2].mxu0 }
  0xe8   :  { %486 = vtanh.f32 %v169_v28  ;;  %v170_v32 = vadd.f32 %v446_v31, %v164_v25  ;;  %v121_v33 = vpop.f32.mrb[3].mxu0 }
  0xe9   :  { %488 = vtanh.f32 %v167_v30  ;;  %v168_v34 = vadd.f32 %v160_v26, %v121_v33 }
  0xea   :  { %490 = vtanh.f32 %v170_v32 }
  0xeb   :  { %492 = vtanh.f32 %v168_v34 }
  0xf2   :  { %v487_v35 = vpop.eup %486 }
  0xf3   :  { %v489_v36 = vpop.eup %488 }
  0xf4   :  { %v491_v37 = vpop.eup %490 }
  0xf5   :  { %v493_v38 = vpop.eup %492  ;;  %v176_v39 = vpack.c.bf16 %v491_v37, %v487_v35 }
  0xf6   :  { %v175_v40 = vpack.c.bf16 %v493_v38, %v489_v36 }
  0xf8   :  { %463 = vmatprep.mubr.bf16.mxu1 %v175_v40 }
  0xf9   :  { %464 = vmatmul.mubr.bf16.vlgmr.msra.gmra.mrb[0].mxu1 %v176_v39 }
 0x1cc   :  { %v465_v41 = vpop.f32.mrb[0].mxu1 }
 0x1cd   :  { %294 = vmax.xlane.f32.xlu1 %v465_v41  ;;  %v275_v42 = vpop.f32.mrb[1].mxu1 }
 0x1ce   :  { %290 = vmax.xlane.f32.xlu0 %v275_v42  ;;  %v466_v43 = vpop.f32.mrb[2].mxu1 }
 0x1cf   :  { %v278_v44 = vpop.f32.mrb[3].mxu1 }
 0x1d1   :  { %296 = vmax.xlane.f32.xlu1 %v466_v43 }
 0x1d2   :  { %292 = vmax.xlane.f32.xlu0 %v278_v44 }
 0x25a   :  { %v295_v45 = vpop.xlane.xlu1 %294 }
 0x25b   :  { %v300_v46 = vsub.f32 %v465_v41, %v295_v45  ;;  %v291_v47 = vpop.xlane.xlu0 %290 }
 0x25c   :  { %v298_v48 = vsub.f32 %v275_v42, %v291_v47 }
 0x25d   :  { %v306_v51 = vmul.f32 1.442695, %v300_v46 }
 0x25e   :  { %v302_v49 = vmul.f32 1.442695, %v298_v48  ;;  %v297_v50 = vpop.xlane.xlu1 %296  ;;  %v384_v48 = vstv %s656_s5 }
 0x25f   :  { %v293_v52 = vpop.xlane.xlu0 %292  ;;  %v301_v53 = vsub.f32 %v466_v43, %v297_v50 }
 0x260   :  { %494 = vpow2.f32 %v302_v49  ;;  %v299_v54 = vsub.f32 %v278_v44, %v293_v52  ;;  %v353_v44 = vld [vmem:[#allocation2] sm:$0x3] }
 0x261   :  { %496 = vpow2.f32 %v306_v51  ;;  %v308_v56 = vmul.f32 1.442695, %v301_v53 }
 0x262   :  { %v304_v55 = vmul.f32 1.442695, %v299_v54 }
 0x264   :  { %498 = vpow2.f32 %v304_v55 }
 0x265   :  { %500 = vpow2.f32 %v308_v56 }
 0x26a   :  { %v495_v59 = vpop.eup %494 }
 0x26b   :  { %310 = vadd.xlane.f32.xlu0 %v495_v59  ;;  %v497_v63 = vpop.eup %496 }
 0x26e   :  { %v499_v0 = vpop.eup %498 }
 0x26f   :  { %314 = vadd.xlane.f32.xlu0 %v497_v63  ;;  %312 = vadd.xlane.f32.xlu1 %v499_v0  ;;  %v501_v6 = vpop.eup %500 }
 0x273   :  { %316 = vadd.xlane.f32.xlu1 %v501_v6  ;;  %334 = vadd.xlane.f32.xlu0 %v333_v1 }
 0x277   :  { %340 = vadd.xlane.f32.xlu0 %v339_v7  ;;  %337 = vadd.xlane.f32.xlu1 %v336_v3 }
 0x27b   :  { %343 = vadd.xlane.f32.xlu1 %v342_v10 }
 0x2f8   :  { %v311_v12 = vpop.xlane.xlu0 %310 }
 0x2f9   :  { %502 = vrcp.f32 %v311_v12 }
 0x2fc   :  { %v313_v13 = vpop.xlane.xlu1 %312  ;;  %v315_v14 = vpop.xlane.xlu0 %314 }
 0x2fd   :  { %504 = vrcp.f32 %v313_v13 }
 0x2fe   :  { %506 = vrcp.f32 %v315_v14 }
 0x300   :  { %v317_v8 = vpop.xlane.xlu1 %316  ;;  %v335_v15 = vpop.xlane.xlu0 %334 }
 0x301   :  { %508 = vrcp.f32 %v317_v8 }
 0x303   :  { %v503_v16 = vpop.eup %502 }
 0x304   :  { %v338_v17 = vpop.xlane.xlu1 %337  ;;  %v349_v18 = vmul.f32 %v503_v16, %v335_v15  ;;  %v341_v20 = vpop.xlane.xlu0 %340 }
 0x306   :  { %v354_v24 = vmul.f32 %v495_v59, %v349_v18 }
 0x307   :  { %v505_v19 = vpop.eup %504 }
 0x308   :  { %v507_v21 = vpop.eup %506  ;;  %v350_v22 = vmul.f32 %v505_v19, %v338_v17  ;;  %v344_v23 = vpop.xlane.xlu1 %343 }
 0x309   :  { %v351_v26 = vmul.f32 %v507_v21, %v341_v20 }
 0x30a   :  { %v355_v25 = vmul.f32 %v499_v0, %v350_v22 }
 0x30b   :  { %v509_v27 = vpop.eup %508  ;;  %v356_v31 = vmul.f32 %v497_v63, %v351_v26 }
 0x30c   :  { %v358_v28 = vadd.f32 %v355_v25, %v354_v24  ;;  %v352_v29 = vmul.f32 %v509_v27, %v344_v23 }
 0x30e   :  { %v359_v30 = vrot.slane %v358_v28, 4  ;;  %v357_v32 = vmul.f32 %v501_v6, %v352_v29 }
 0x310   :  { %v360_v33 = vadd.f32 %v359_v30, %v358_v28  ;;  %v365_v34 = vadd.f32 %v357_v32, %v356_v31 }
 0x312   :  { %v361_v35 = vrot.slane %v360_v33, 2  ;;  %v366_v36 = vrot.slane %v365_v34, 4 }
 0x314   :  { %v362_v37 = vadd.f32 %v361_v35, %v360_v33  ;;  %v367_v38 = vadd.f32 %v366_v36, %v365_v34 }
 0x316   :  { %v368_v39 = vrot.slane %v367_v38, 2  ;;  %v363_v40 = vrot.slane %v362_v37, 1 }
 0x318   :  { %v369_v41 = vadd.f32 %v368_v39, %v367_v38  ;;  %v364_v43 = vadd.f32 %v363_v40, %v362_v37 }
 0x31a   :  { %v370_v42 = vrot.slane %v369_v41, 1 }
 0x31c   :  { %v371_v45 = vadd.f32 %v370_v42, %v369_v41 }
 0x31e   :  { %v375_v46 = vsel %vm374_vm1, %v371_v45, %v364_v43 }
 0x31f   :  { %v377_v47 = vadd.f32 %v375_v46, %v353_v44 }
 0x321   :  { %378 = vst [vmem:[#allocation2] sm:$0x3] %v377_v47 }
 0x328   :  { %v382_v49 = vld [vmem:[#allocation2] sm:$0x3] }
 0x329   :  { %v385_v50 = vadd.f32 %v384_v48, %v382_v49 }
 0x32b   :  { %386 = vst [vmem:[#allocation4] sm:$0x3] %v385_v50 }
 0x32c   :  { %521 = shalt.err (!%p518_p4)
}
 0x32d   :  { %s522_s7 = scalar_lea.hbm %s657_s6, 32 }
 0x32e   :  { %p523_p5 = scmp.ne.s32.totalorder %s657_s6, %s522_s7  ;;  %p526_p6 = scmp.lt.u32.totalorder %s522_s7, %s657_s6 }
 0x330   :  { %p528_p7 = pnand %p526_p6, %p523_p5 }
 0x332   :  { %531 = shalt.err (!%p528_p7)
}
 0x333   :  { %396 = dma.vmem_to_hbm [thread:$0]  %s394_s27, 32, %s657_s6, [#allocation5]  }
 0x334   :  { %532 = dma.done.wait [#allocation5], 32  }
 0x335   :  { %533 = vsyncadd [#allocation5], 4294967264 }
 0x336   :  { %400 = vsyncpa [#allocation5], 1 }

</bundles_post_ra>
